<compile_context>
chip_gen: v7x
topology: tpu7x:2x2x1
jax: 0.10.0
libtpu: 0.0.40
codegen_flags: <defaults>
</compile_context>

<pallas_src>
import functools

import jax
import jax.numpy as jnp
from jax import lax
from jax.experimental import pallas as pl
from jax.experimental.pallas import tpu as pltpu


def _pow_p(x, p_ref, static_p):
    """Return (x**p, 1/p); VPU integer_pow fast path for static integer p."""
    if static_p is not None:
        return lax.integer_pow(x, static_p), jnp.float32(1.0 / static_p)
    p = p_ref[0]                      # learnable exponent from SMEM
    return jnp.power(x, p), 1.0 / p   # exp(p*log(x)) on the EUP


def _gem_kernel(*refs, eps, hw, k, static_p):
    # refs = ([p_ref,] x_ref, o_ref); x tile: (block_rows, k*hw); out: (block_rows, k)
    if static_p is None:
        p_ref, x_ref, o_ref = refs
    else:
        p_ref = None
        x_ref, o_ref = refs

    x = jnp.maximum(x_ref[...].astype(jnp.float32), eps)     # clamp(min=eps)
    xp, inv_p = _pow_p(x, p_ref, static_p)

    if k == 1:
        s = jnp.sum(xp, axis=-1, keepdims=True)               # (rows, 1)
    else:
        # Segment-sum over the k packed rows via the (idle) MXU:
        # S[c, j] = 1.0 iff column c belongs to packed segment j.
        col = lax.broadcasted_iota(jnp.int32, (k * hw, k), 0) // hw
        seg = lax.broadcasted_iota(jnp.int32, (k * hw, k), 1)
        s_mat = (col == seg).astype(jnp.float32)
        s = jnp.dot(xp, s_mat, preferred_element_type=jnp.float32)  # (rows, k)

    m = s / jnp.float32(hw)                                    # spatial mean
    o_ref[...] = jnp.power(m, inv_p).astype(o_ref.dtype)


def _gem_kernel_chunked(*refs, eps, hw, chunk, static_p):
    # refs = ([p_ref,] x_ref, o_ref, acc_ref); grid = (row_blocks, hw_chunks)
    if static_p is None:
        p_ref, x_ref, o_ref, acc_ref = refs
    else:
        p_ref = None
        x_ref, o_ref, acc_ref = refs

    kc = pl.program_id(1)

    @pl.when(kc == 0)
    def _init():
        acc_ref[...] = jnp.zeros_like(acc_ref)

    x = jnp.maximum(x_ref[...].astype(jnp.float32), eps)
    xp, inv_p = _pow_p(x, p_ref, static_p)
    # Mask columns past H*W (the last chunk may read out-of-bounds lanes).
    col = kc * chunk + lax.broadcasted_iota(jnp.int32, xp.shape, 1)
    xp = jnp.where(col < hw, xp, 0.0)
    acc_ref[...] += jnp.sum(xp, axis=-1, keepdims=True)

    @pl.when(kc == pl.num_programs(1) - 1)
    def _finalize():
        m = acc_ref[...] / jnp.float32(hw)
        o_ref[...] = jnp.power(m, inv_p).astype(o_ref.dtype)


def _choose_pack(m_rows, hw, itemsize, max_row_bytes):
    """Pick k (a divisor of m_rows) packing k rows per lane row for lane density."""
    if hw % 128 == 0:
        return 1

    def util(width):
        return width / float(pl.cdiv(width, 128) * 128)

    best_k, best_u = 1, util(hw)
    limit = max(1, min(m_rows, max_row_bytes // max(1, hw * itemsize), 1024))
    for k in range(2, limit + 1):
        if m_rows % k:
            continue
        u = util(k * hw)
        if u > best_u + 1e-9:
            best_k, best_u = k, u
        if best_u >= 0.999:
            break
    return best_k


def _choose_rows(m_rows, row_bytes, sub, target_tile_bytes, block_rows):
    if block_rows is not None:
        br = min(int(block_rows), m_rows)
        if br < m_rows and br % sub != 0:
            raise ValueError(f"block_rows must be a multiple of {sub}")
        return br
    rows_fit = max(sub, (target_tile_bytes // row_bytes) // sub * sub)
    return m_rows if rows_fit >= m_rows else rows_fit


def gem_pooling(x, p, eps=1e-6, *, static_p=None, block_rows=None,
                hw_chunk=None, target_tile_bytes=4 * 1024 * 1024):
    """GeM pooling.  x: (N, C, H, W); p: (1,) learnable exponent -> (N, C, 1, 1).

    static_p: optional Python int.  If given, the kernel uses the VPU
    integer-power fast path (and drops the SMEM p operand); must match p.
    """
    N, C, H, W = x.shape
    M = N * C
    HW = H * W
    itemsize = jnp.dtype(x.dtype).itemsize
    sub = max(8, 32 // itemsize)          # sublane tile: 8 f32 / 16 bf16 / 32 i8

    p = jnp.asarray(p, dtype=jnp.float32).reshape((1,))
    if static_p is not None:
        static_p = int(static_p)
        try:                               # trace-time divergence check
            pv = float(p[0])
            if abs(pv - static_p) > 1e-5:
                raise ValueError(
                    f"static_p={static_p} does not match learnable p={pv}")
        except (jax.errors.ConcretizationTypeError, TypeError):
            pass                           # p is a tracer; trust the caller

    lane_pad = lambda w: pl.cdiv(w, 128) * 128
    dyn = static_p is None
    cost = pl.CostEstimate(
        flops=8 * M * HW,
        transcendentals=(2 * M * HW if dyn else 0) + 2 * M,
        bytes_accessed=M * HW * itemsize + M * itemsize,
    )
    cparams = dict(vmem_limit_bytes=32 * 1024 * 1024)

    # Chunk the H*W reduction (P3) when even a minimum sub-row slab would blow
    # the per-buffer budget (matters most on v7x's smaller VMEM).
    use_chunked = (hw_chunk is not None or
                   lane_pad(HW) * itemsize * sub > target_tile_bytes)

    if not use_chunked:
        # Pack k adjacent rows per lane row; k divides M so no host pad copy.
        k = _choose_pack(M, HW, itemsize, max_row_bytes=target_tile_bytes // sub)
        mp, width = M // k, k * HW
        row_bytes = lane_pad(width) * itemsize          # 128-lane padded footprint
        br = _choose_rows(mp, row_bytes, sub, target_tile_bytes, block_rows)
        grid = (pl.cdiv(mp, br),)                       # partial tail block is OK

        in_specs = [pl.BlockSpec((br, width), lambda i: (i, 0))]
        args = [x.reshape(mp, width)]
        if dyn:
            in_specs = [pl.BlockSpec(memory_space=pltpu.MemorySpace.SMEM)] + in_specs
            args = [p] + args

        out2 = pl.pallas_call(
            functools.partial(_gem_kernel, eps=float(eps), hw=HW, k=k,
                              static_p=static_p),
            out_shape=jax.ShapeDtypeStruct((mp, k), x.dtype),
            grid=grid,
            in_specs=in_specs,
            out_specs=pl.BlockSpec((br, k), lambda i: (i, 0)),
            compiler_params=pltpu.CompilerParams(
                dimension_semantics=("parallel",), **cparams),
            cost_estimate=cost,
        )(*args)
        return out2.reshape(N, C, 1, 1)

    # ---- chunked-HW path (very large feature maps) ----
    chunk = (target_tile_bytes // (sub * itemsize)) if hw_chunk is None else int(hw_chunk)
    chunk = max(128, chunk // 128 * 128)
    chunk = min(chunk, lane_pad(HW))
    br = _choose_rows(M, chunk * itemsize, sub, target_tile_bytes, block_rows)
    grid = (pl.cdiv(M, br), pl.cdiv(HW, chunk))

    in_specs = [pl.BlockSpec((br, chunk), lambda i, kc: (i, kc))]
    args = [x.reshape(M, HW)]
    if dyn:
        in_specs = [pl.BlockSpec(memory_space=pltpu.MemorySpace.SMEM)] + in_specs
        args = [p] + args

    out2 = pl.pallas_call(
        functools.partial(_gem_kernel_chunked, eps=float(eps), hw=HW,
                          chunk=chunk, static_p=static_p),
        out_shape=jax.ShapeDtypeStruct((M, 1), x.dtype),
        grid=grid,
        in_specs=in_specs,
        out_specs=pl.BlockSpec((br, 1), lambda i, kc: (i, 0)),
        scratch_shapes=[pltpu.VMEM((br, 1), jnp.float32)],
        compiler_params=pltpu.CompilerParams(
            dimension_semantics=("parallel", "arbitrary"), **cparams),
        cost_estimate=cost,
    )(*args)
    return out2.reshape(N, C, 1, 1)


def gem_pooling_ref(x, p, eps=1e-6):
    xf = jnp.maximum(x.astype(jnp.float32), eps) ** p[0]
    m = jnp.mean(xf, axis=(2, 3), keepdims=True)
    return (m ** (1.0 / p[0])).astype(x.dtype)


if __name__ == "__main__":
    key = jax.random.PRNGKey(0)
    k1, k2, k3, k4, k5 = jax.random.split(key, 5)

    # Deterministic parameter init, matching nn.Parameter(torch.ones(1) * 3).
    p = jnp.ones((1,), dtype=jnp.float32) * 3.0

    def check(y, x, name):
        r = gem_pooling_ref(x, p)
        assert y.shape == r.shape, (name, y.shape, r.shape)
        err = float(jnp.max(jnp.abs(y - r)))
        assert jnp.allclose(y, r, rtol=1e-4, atol=1e-5), (name, err)

    # 1) Spec shape, static-p VPU fast path, lane-aligned HW (16*16 = 256).
    x1 = jax.random.normal(k1, (2, 4, 16, 16), dtype=jnp.float32)
    y1 = jax.block_until_ready(gem_pooling(x1, p, static_p=3))
    check(y1, x1, "static_p HW=256")

    # 2) Dynamic (learnable) p + lane packing (7x7=49 -> 5 rows per lane row).
    x2 = jax.random.normal(k2, (3, 5, 7, 7), dtype=jnp.float32)
    y2 = jax.block_until_ready(gem_pooling(x2, p))
    check(y2, x2, "dynamic p HW=49 packed")

    # 3) Multi-step row-block grid (pipelining / megacore sharding) + packing.
    x3 = jax.random.normal(k3, (2, 16, 8, 8), dtype=jnp.float32)
    y3 = jax.block_until_ready(gem_pooling(x3, p, static_p=3, block_rows=8))
    check(y3, x3, "static_p multi-block HW=64 packed")

    # 4) Chunked-HW reduction path (P3 accumulator), forced via hw_chunk.
    x4 = jax.random.normal(k4, (2, 4, 16, 16), dtype=jnp.float32)
    y4 = jax.block_until_ready(gem_pooling(x4, p, hw_chunk=128))
    check(y4, x4, "dynamic p chunked HW")

    # 5) Partial tail row-block (no host pad; OOB rows read garbage, writes dropped).
    x5 = jax.random.normal(k5, (3, 16, 8, 8), dtype=jnp.float32)
    y5 = jax.block_until_ready(gem_pooling(x5, p, static_p=3, block_rows=16))
    check(y5, x5, "static_p partial tail block")

    print("KERNEL_OK")
</pallas_src>

<mosaic_0001>
module attributes {stable_mosaic.version = 11 : i64} {
  func.func @_gem_kernel(%arg0: i32, %arg1: memref<8x256xf32, #tpu.memory_space<vmem>>, %arg2: memref<8x1xf32, #tpu.memory_space<vmem>>) attributes {dimension_semantics = [#tpu.dimension_semantics<parallel>], iteration_bounds = array<i64: 1>, scalar_prefetch = 0 : i64, scratch_operands = 0 : i64, tpu.core_type = #tpu.core_type<tc>, window_params = [{transform_indices = @transform_0, window_bounds = array<i64: 8, 256>}, {transform_indices = @transform_1, window_bounds = array<i64: 8, 1>}]} {
    %c0 = arith.constant 0 : index
    %c0_0 = arith.constant 0 : index
    %0 = vector.load %arg1[%c0, %c0_0] : memref<8x256xf32, #tpu.memory_space<vmem>>, vector<8x256xf32>
    %cst = arith.constant 9.99999997E-7 : f32
    %1 = vector.broadcast %cst : f32 to vector<8x256xf32>
    %2 = arith.maximumf %0, %1 : vector<8x256xf32>
    %3 = arith.mulf %2, %2 : vector<8x256xf32>
    %4 = arith.mulf %2, %3 : vector<8x256xf32>
    %cst_1 = arith.constant dense<0.000000e+00> : vector<8xf32>
    %5 = vector.multi_reduction <add>, %4, %cst_1 [1] : vector<8x256xf32> to vector<8xf32>
    %6 = vector.shape_cast %5 : vector<8xf32> to vector<8x1xf32>
    %cst_2 = arith.constant 2.560000e+02 : f32
    %7 = vector.broadcast %cst_2 : f32 to vector<8x1xf32>
    %8 = arith.divf %6, %7 : vector<8x1xf32>
    %cst_3 = arith.constant 0.333333343 : f32
    %9 = vector.broadcast %cst_3 : f32 to vector<8x1xf32>
    %10 = math.powf %8, %9 : vector<8x1xf32>
    %c0_4 = arith.constant 0 : index
    %c0_5 = arith.constant 0 : index
    %11 = vector.load %arg2[%c0_4, %c0_5] : memref<8x1xf32, #tpu.memory_space<vmem>>, vector<8x1xf32>
    tpu.vector_store %arg2[%c0_4, %c0_5], %10 {strides = array<i32>} : memref<8x1xf32, #tpu.memory_space<vmem>>, vector<8x1xf32>,
    return
  }
  func.func @transform_0(%arg0: i32) -> (i32, i32) {
    %c0_i32 = arith.constant 0 : i32
    %c0_i32_0 = arith.constant 0 : i32
    return %arg0, %c0_i32 : i32, i32
  }
  func.func @transform_1(%arg0: i32) -> (i32, i32) {
    %c0_i32 = arith.constant 0 : i32
    %c0_i32_0 = arith.constant 0 : i32
    return %arg0, %c0_i32 : i32, i32
  }
}

</mosaic_0001>

<bundles_post_ra>
// kernel: tpu_custom_call.1
= control target key start
LH: loop header
LB: loop body
LE: loop exit
PB: predicated region body
PF: predicated region fallthrough
CT: control target
= control target key end

     0   :  { %6 = vsyncpa [#allocation3], 0  ;;  %s88_s6 = smov [#allocation2]   ;;  %s114_s0 = inlined_call_operand.hbm [shape: f32[8,256], index: 0, kind: input, shape index: {}]   ;;  %s115_s1 = inlined_call_operand.vmem [shape: f32[8,1], index: 1, kind: output, shape index: {}]  }
   0x1   :  { %s13_s7 = sshll.u32 %s88_s6, 4  ;;  %s64_s10 = scalar_lea.hbm %s114_s0, 256  ;;  %s14_s7 = int_to_ptr.vmem [resolvable:$true] %s13_s7 }
   0x2   :  { %p65_p0 = scmp.ne.s32.totalorder %s114_s0, %s64_s10  ;;  %p68_p1 = scmp.lt.u32.totalorder %s64_s10, %s114_s0 }
   0x4   :  { %p70_p2 = pnand %p68_p1, %p65_p0 }
   0x6   :  { %73 = shalt.err (!%p70_p2)
}
   0x7   :  { %s74_s15 = scalar_lea.vmem %s14_s7, 256  ;;  %p79_p4 = scmp.lt.s32.totalorder %s14_s7, %s14_s7 }
   0x8   :  { %p75_p3 = scmp.ne.s32.totalorder %s14_s7, %s74_s15  ;;  %p80_p5 = scmp.lt.s32.totalorder %s74_s15, %s74_s15 }
   0xa   :  { %p81_p6 = por %p80_p5, %p79_p4 }
   0xc   :  { %p82_p7 = pnand %p81_p6, %p75_p3 }
   0xe   :  { %85 = shalt.err (!%p82_p7)
}
   0xf   :  { %16 = dma.hbm_to_vmem [thread:$0]  %s114_s0, 256, %s14_s7, [#allocation3]  }
  0x10   :  { %86 = dma.done.wait [#allocation3], 256  }
  0x11   :  { %87 = vsyncadd [#allocation3], 4294967040  ;;  %v20_v0 = vld [vmem:[#allocation2] sm:$0xff]  ;;  %v21_v1 = vld [vmem:[#allocation2 + $0x8] sm:$0xff]  ;;  %vm34_vm4 = vcmask 7168  }
  0x12   :  { %v22_v2 = vmax.f32 %v20_v0, 1e-06  ;;  %v23_v3 = vmax.f32 %v21_v1, 1e-06 }
  0x14   :  { %v24_v4 = vmul.f32 %v22_v2, %v22_v2  ;;  %v25_v5 = vmul.f32 %v23_v3, %v23_v3 }
  0x16   :  { %v26_v6 = vmul.f32 %v24_v4, %v22_v2  ;;  %v27_v7 = vmul.f32 %v25_v5, %v23_v3 }
  0x18   :  { %v28_v8 = vadd.f32 %v27_v7, %v26_v6 }
  0x1a   :  { %29 = vadd.xlane.f32.xlu0 %v28_v8 }
  0xa7   :  { %v30_v9 = vpop.xlane.xlu0 %29 }
  0xa8   :  { %v32_v10 = vmul.f32 0.00390625, %v30_v9 }
  0xaa   :  { %v43_v11 = vand.u32 2147483647, %v32_v10  ;;  %v47_v14 = vand.u32 2147483648, %v32_v10  ;;  %vm42_vm2 = vcmp.lt.f32.partialorder %v32_v10, 0.0  ;;  %vm41_vm3 = vcmp.eq.f32.partialorder %v32_v10, 0.0 }
  0xac   :  { %60 = vlog2.f32 %v43_v11  ;;  %vm51_vm0 = vweird.f32 %v43_v11  ;;  %vm53_vm1 = vcmp.eq.f32.partialorder %v43_v11, 0.0  ;;  %vm44_vm5 = vcmp.eq.f32.partialorder %v43_v11, inf }
  0xb6   :  { %v61_v12 = vpop.eup %60 }
  0xb7   :  { %v48_v13 = vmul.f32 0.33333334, %v61_v12 }
  0xb9   :  { %62 = vpow2.f32 %v48_v13 }
  0xc3   :  { %v63_v15 = vpop.eup %62 }
  0xc4   :  { %v50_v16 = vor.u32 %v63_v15, %v47_v14 }
  0xc6   :  { %v52_v17 = vsel %vm51_vm0, %v32_v10, %v50_v16 }
  0xc7   :  { %v55_v18 = vsel %vm53_vm1, %v47_v14, %v52_v17 }
  0xc8   :  { %v56_v19 = vsel %vm42_vm2, nan, %v55_v18 }
  0xc9   :  { %v57_v20 = vsel %vm41_vm3, 0.0, %v56_v19 }
  0xca   :  { %v58_v21 = vsel %vm44_vm5, inf, %v57_v20 }
  0xcb   :  { %35 = vst.msk [vmem:[%s115_s1] sm:$0xff] %vm34_vm4, %v58_v21 }
  0xcc   :  { %40 = vsyncpa [#allocation3], 1 }

</bundles_post_ra>
